<compile_context>
chip_gen: v5e
topology: v5e:2x2
jax: 0.10.0
libtpu: 0.0.40
codegen_flags: <defaults>
</compile_context>

<pallas_src>
import functools

import jax
import jax.numpy as jnp
import numpy as np
from jax import lax
from jax.experimental import pallas as pl
from jax.experimental.pallas import tpu as pltpu


def _round_up(x, m):
    return ((x + m - 1) // m) * m


def _tpu_defaults():
    """(max token tile, scoped-VMEM limit) chosen per TPU generation."""
    try:
        kind = jax.devices()[0].device_kind.lower()
    except Exception:  # pragma: no cover - defensive
        kind = ""
    if "v5" in kind or "v6" in kind:
        # 128 MiB physical VMEM -> bigger tiles, higher scoped-VMEM cap.
        return 4096, 100 * 1024 * 1024
    # v7x (64 MiB physical VMEM) or unknown: stay conservative.
    return 2048, 48 * 1024 * 1024


def _pick_tm(M, tm_max):
    """Token tile: big, padding-free when possible, >=2 steps for megacore."""
    M8 = _round_up(M, 8)
    if M8 <= tm_max:
        # Large single-tile problems: split into two parallel steps so both
        # v7x TensorCores are used.  Tiny inputs stay a single tile.
        if M8 >= 2048 and M8 % 16 == 0:
            return M8 // 2
        return M8
    n_steps = -(-M8 // tm_max)                 # cdiv
    return _round_up(-(-M8 // n_steps), 8)     # near-equal tiles, <=8 pad rows/step


def _pick_hidden_chunk(H):
    """Hidden-dim chunk width (lane-aligned) for in-kernel H chunking."""
    if H % 128 != 0:
        return H                                # no chunking (odd hidden size)
    for cand in (512, 384, 256, 128):
        if H % cand == 0:
            return cand
    return H


def _const_spec(shape):
    """BlockSpec for a grid-invariant operand (fetched once).

    Single-buffer it when the installed JAX supports pipeline_mode; the
    fallback just keeps the default double buffer (only a VMEM-size cost).
    """
    index_map = lambda i: (0,) * len(shape)
    try:
        return pl.BlockSpec(shape, index_map, pipeline_mode=pl.Buffered(1))
    except TypeError:
        return pl.BlockSpec(shape, index_map)


def _mlp_kernel(x_ref, w1_ref, b1_ref, w2_ref, b2_ref, o_ref, acc_ref, *, hc, n_hc):
    """y = relu(x @ W1 + b1) @ W2 + b2 for one (tm, C_in) token tile.

    x arrives in its original dtype and is cast to the weight dtype (bf16)
    here, so there is no extra HBM pass in the wrapper.  Both matmuls use the
    MXU with f32 accumulation; bias + ReLU stay in f32.
    """
    x = x_ref[...].astype(w1_ref.dtype)

    if n_hc == 1:
        # Small hidden dim: no chunking needed.
        h = jnp.dot(x, w1_ref[...], preferred_element_type=jnp.float32) + b1_ref[...]
        h = jnp.maximum(h, 0.0).astype(w2_ref.dtype)
        acc = jnp.dot(h, w2_ref[...], preferred_element_type=jnp.float32)
        o_ref[...] = (acc + b2_ref[...]).astype(o_ref.dtype)
    else:
        # Chunk the hidden dim so the VPU epilogue (bias+ReLU+cast) of one
        # chunk overlaps with the MXU work of the next, and the live
        # intermediate is only (tm, hc) instead of (tm, H).
        acc_ref[...] = jnp.zeros_like(acc_ref)

        def body(c, carry):
            off = pl.multiple_of(c * hc, hc)
            h = (
                jnp.dot(x, w1_ref[:, pl.ds(off, hc)],
                        preferred_element_type=jnp.float32)
                + b1_ref[:, pl.ds(off, hc)]
            )
            h = jnp.maximum(h, 0.0).astype(w2_ref.dtype)
            acc_ref[...] += jnp.dot(h, w2_ref[pl.ds(off, hc), :],
                                    preferred_element_type=jnp.float32)
            return carry

        lax.fori_loop(0, n_hc, body, 0, unroll=True)
        o_ref[...] = (acc_ref[...] + b2_ref[...]).astype(o_ref.dtype)


@functools.partial(jax.jit, static_argnames=("tm_max", "out_dtype"))
def sam_mlp_block(x, w1, b1, w2, b2, *, tm_max=None, out_dtype=None):
    """Fused SAM MLP block (lin2(relu(lin1(x))) with 1x1-conv-as-linear).

    x : (B, N, C_in) tokens (any float dtype; cast to bf16 inside the kernel)
    w1: (C_in, H)   == torch lin1.weight.T   b1: (H,)
    w2: (H, C_out)  == torch lin2.weight.T   b2: (C_out,)
    Returns (B, N, C_out) in out_dtype (default: x.dtype).
    """
    B, N, C_in = x.shape
    H = w1.shape[1]
    C_out = w2.shape[1]
    M = B * N

    if out_dtype is None:
        out_dtype = x.dtype

    default_tm, vmem_limit = _tpu_defaults()
    if tm_max is None:
        tm_max = default_tm

    tm = _pick_tm(M, tm_max)
    M_pad = _round_up(M, tm)
    grid = (M_pad // tm,)

    x2d = x.reshape(M, C_in)
    if M_pad != M:
        # Rare (tm is chosen to divide the token count when possible); padded
        # rows compute garbage that is sliced off below.
        x2d = jnp.pad(x2d, ((0, M_pad - M), (0, 0)))

    compute_dtype = jnp.bfloat16
    # Params should be stored in bf16 at load time (see __main__); these casts
    # are then no-ops.  Biases stay f32 (accumulation / epilogue precision).
    w1c = w1.astype(compute_dtype)
    w2c = w2.astype(compute_dtype)
    b1_2d = b1.reshape(1, H).astype(jnp.float32)
    b2_2d = b2.reshape(1, C_out).astype(jnp.float32)

    hc = _pick_hidden_chunk(H)
    n_hc = H // hc if hc else 1

    kernel = functools.partial(_mlp_kernel, hc=hc, n_hc=n_hc)

    # VMEM budget @ SAM shapes (tm=2048, C=256, H=2048, hc=512):
    #   x tile f32 2 MiB x2 buf + out 2 MiB x2 buf + weights ~2 MiB
    #   + acc scratch 2 MiB + transient h chunk ~6 MiB  ->  ~18 MiB  (<48 MiB).
    out2d = pl.pallas_call(
        kernel,
        out_shape=jax.ShapeDtypeStruct((M_pad, C_out), out_dtype),
        grid_spec=pltpu.PrefetchScalarGridSpec(
            num_scalar_prefetch=0,
            grid=grid,
            in_specs=[
                pl.BlockSpec((tm, C_in), lambda i: (i, 0)),
                _const_spec((C_in, H)),
                _const_spec((1, H)),
                _const_spec((H, C_out)),
                _const_spec((1, C_out)),
            ],
            out_specs=pl.BlockSpec((tm, C_out), lambda i: (i, 0)),
            scratch_shapes=[pltpu.VMEM((tm, C_out), jnp.float32)],
        ),
        compiler_params=pltpu.CompilerParams(
            dimension_semantics=("parallel",),
            vmem_limit_bytes=vmem_limit,
        ),
    )(x2d, w1c, b1_2d, w2c, b2_2d)

    return out2d[:M].reshape(B, N, C_out)


def _reference(x, w1, b1, w2, b2):
    h = jnp.maximum(jnp.einsum("bnc,ch->bnh", x, w1) + b1, 0.0)
    return jnp.einsum("bnh,hc->bnc", h, w2) + b2


if __name__ == "__main__":
    # Small but lane-dense shapes consistent with the module's forward:
    # B=2 batches, N=8 tokens, embedding_dim=128, mlp hidden=256.
    # (Real SAM2 uses 256 / 2048 with 4096 image tokens, also lane-dense.)
    B, N, C, Hdim = 2, 8, 128, 256
    key = jax.random.PRNGKey(0)
    kx, k1, k2, k3, k4 = jax.random.split(key, 5)

    x = jax.random.normal(kx, (B, N, C), dtype=jnp.float32)
    # Linear weights stored as (in, out) == torch W^T, pre-cast to bf16 ONCE
    # at "parameter load time" so the per-call casts in the wrapper are no-ops.
    w1 = (jax.random.normal(k1, (C, Hdim), dtype=jnp.float32) * 0.05).astype(jnp.bfloat16)
    b1 = jax.random.normal(k2, (Hdim,), dtype=jnp.float32) * 0.05
    w2 = (jax.random.normal(k3, (Hdim, C), dtype=jnp.float32) * 0.05).astype(jnp.bfloat16)
    b2 = jax.random.normal(k4, (C,), dtype=jnp.float32) * 0.05

    y = jax.block_until_ready(sam_mlp_block(x, w1, b1, w2, b2))

    y_ref = jax.block_until_ready(
        _reference(x, w1.astype(jnp.float32), b1, w2.astype(jnp.float32), b2)
    )
    assert y.shape == (B, N, C)
    # bf16 MXU operands (f32 accumulation) -> relaxed tolerance vs f32 ref.
    assert np.allclose(np.asarray(y), np.asarray(y_ref), atol=2e-2, rtol=2e-2)

    print("KERNEL_OK")
</pallas_src>

<mosaic_0001>
module attributes {stable_mosaic.version = 11 : i64} {
  func.func @_mlp_kernel(%arg0: i32, %arg1: memref<16x128xf32, #tpu.memory_space<vmem>>, %arg2: memref<128x256xbf16, #tpu.memory_space<vmem>>, %arg3: memref<1x256xf32, #tpu.memory_space<vmem>>, %arg4: memref<256x128xbf16, #tpu.memory_space<vmem>>, %arg5: memref<1x128xf32, #tpu.memory_space<vmem>>, %arg6: memref<16x128xf32, #tpu.memory_space<vmem>>, %arg7: memref<16x128xf32, #tpu.memory_space<vmem>>) attributes {dimension_semantics = [#tpu.dimension_semantics<parallel>], iteration_bounds = array<i64: 1>, scalar_prefetch = 0 : i64, scratch_operands = 1 : i64, tpu.core_type = #tpu.core_type<tc>, window_params = [{transform_indices = @transform_0, window_bounds = array<i64: 16, 128>}, {pipeline_mode = #tpu.pipeline_mode<synchronous>, transform_indices = @transform_1, window_bounds = array<i64: 128, 256>}, {pipeline_mode = #tpu.pipeline_mode<synchronous>, transform_indices = @transform_2, window_bounds = array<i64: 1, 256>}, {pipeline_mode = #tpu.pipeline_mode<synchronous>, transform_indices = @transform_3, window_bounds = array<i64: 256, 128>}, {pipeline_mode = #tpu.pipeline_mode<synchronous>, transform_indices = @transform_4, window_bounds = array<i64: 1, 128>}, {transform_indices = @transform_5, window_bounds = array<i64: 16, 128>}]} {
    %c0 = arith.constant 0 : index
    %c0_0 = arith.constant 0 : index
    %0 = vector.load %arg1[%c0, %c0_0] : memref<16x128xf32, #tpu.memory_space<vmem>>, vector<16x128xf32>
    %1 = arith.truncf %0 : vector<16x128xf32> to vector<16x128xbf16>
    %c0_1 = arith.constant 0 : index
    %c0_2 = arith.constant 0 : index
    %2 = vector.load %arg2[%c0_1, %c0_2] : memref<128x256xbf16, #tpu.memory_space<vmem>>, vector<128x256xbf16>
    %cst = arith.constant dense<0.000000e+00> : vector<16x256xf32>
    %3 = tpu.matmul %1, %2, %cst {dimension_numbers = #tpu.dot_dimension_numbers<[1], [0], [0], [1], [0, 0, 1, 1], [], []>} : vector<16x128xbf16>, vector<128x256xbf16>, vector<16x256xf32> -> vector<16x256xf32>
    %c0_3 = arith.constant 0 : index
    %c0_4 = arith.constant 0 : index
    %4 = vector.load %arg3[%c0_3, %c0_4] : memref<1x256xf32, #tpu.memory_space<vmem>>, vector<1x256xf32>
    %5 = vector.broadcast %4 : vector<1x256xf32> to vector<16x256xf32>
    %6 = arith.addf %3, %5 : vector<16x256xf32>
    %cst_5 = arith.constant 0.000000e+00 : f32
    %7 = vector.broadcast %cst_5 : f32 to vector<16x256xf32>
    %8 = arith.maximumf %6, %7 : vector<16x256xf32>
    %9 = arith.truncf %8 : vector<16x256xf32> to vector<16x256xbf16>
    %c0_6 = arith.constant 0 : index
    %c0_7 = arith.constant 0 : index
    %10 = vector.load %arg4[%c0_6, %c0_7] : memref<256x128xbf16, #tpu.memory_space<vmem>>, vector<256x128xbf16>
    %cst_8 = arith.constant dense<0.000000e+00> : vector<16x128xf32>
    %11 = tpu.matmul %9, %10, %cst_8 {dimension_numbers = #tpu.dot_dimension_numbers<[1], [0], [0], [1], [0, 0, 1, 1], [], []>} : vector<16x256xbf16>, vector<256x128xbf16>, vector<16x128xf32> -> vector<16x128xf32>
    %c0_9 = arith.constant 0 : index
    %c0_10 = arith.constant 0 : index
    %12 = vector.load %arg5[%c0_9, %c0_10] : memref<1x128xf32, #tpu.memory_space<vmem>>, vector<1x128xf32>
    %13 = vector.broadcast %12 : vector<1x128xf32> to vector<16x128xf32>
    %14 = arith.addf %11, %13 : vector<16x128xf32>
    %c0_11 = arith.constant 0 : index
    %c0_12 = arith.constant 0 : index
    %15 = vector.load %arg6[%c0_11, %c0_12] : memref<16x128xf32, #tpu.memory_space<vmem>>, vector<16x128xf32>
    tpu.vector_store %arg6[%c0_11, %c0_12], %14 {strides = array<i32>} : memref<16x128xf32, #tpu.memory_space<vmem>>, vector<16x128xf32>,
    return
  }
  func.func @transform_0(%arg0: i32) -> (i32, i32) {
    %c0_i32 = arith.constant 0 : i32
    %c0_i32_0 = arith.constant 0 : i32
    return %arg0, %c0_i32 : i32, i32
  }
  func.func @transform_1(%arg0: i32) -> (i32, i32) {
    %c0_i32 = arith.constant 0 : i32
    %c0_i32_0 = arith.constant 0 : i32
    %c0_i32_1 = arith.constant 0 : i32
    return %c0_i32, %c0_i32_0 : i32, i32
  }
  func.func @transform_2(%arg0: i32) -> (i32, i32) {
    %c0_i32 = arith.constant 0 : i32
    %c0_i32_0 = arith.constant 0 : i32
    %c0_i32_1 = arith.constant 0 : i32
    return %c0_i32, %c0_i32_0 : i32, i32
  }
  func.func @transform_3(%arg0: i32) -> (i32, i32) {
    %c0_i32 = arith.constant 0 : i32
    %c0_i32_0 = arith.constant 0 : i32
    %c0_i32_1 = arith.constant 0 : i32
    return %c0_i32, %c0_i32_0 : i32, i32
  }
  func.func @transform_4(%arg0: i32) -> (i32, i32) {
    %c0_i32 = arith.constant 0 : i32
    %c0_i32_0 = arith.constant 0 : i32
    %c0_i32_1 = arith.constant 0 : i32
    return %c0_i32, %c0_i32_0 : i32, i32
  }
  func.func @transform_5(%arg0: i32) -> (i32, i32) {
    %c0_i32 = arith.constant 0 : i32
    %c0_i32_0 = arith.constant 0 : i32
    return %arg0, %c0_i32 : i32, i32
  }
}

</mosaic_0001>

<bundles_post_ra>
// kernel: sam_mlp_block.1
= control target key start
LH: loop header
LB: loop body
LE: loop exit
PB: predicated region body
PF: predicated region fallthrough
CT: control target
= control target key end

     0   :  { %10 = vsyncpa [#allocation4], 0  ;;  %s725_s0 = inlined_call_operand.hbm [shape: f32[16,128], index: 0, kind: input, shape index: {}]   ;;  %s726_s1 = inlined_call_operand.hbm [shape: bf16[128,256], index: 1, kind: input, shape index: {}]   ;;  %s727_s2 = inlined_call_operand.vmem [shape: f32[1,256], index: 2, kind: input, shape index: {}]   ;;  %s728_s3 = inlined_call_operand.hbm [shape: bf16[256,128], index: 3, kind: input, shape index: {}]   ;;  %s729_s4 = inlined_call_operand.vmem [shape: f32[1,128], index: 4, kind: input, shape index: {}]   ;;  %s730_s5 = inlined_call_operand.hbm [shape: f32[16,128], index: 5, kind: output, shape index: {}]  }
   0x1   :  { %11 = vsyncpa [#allocation7], 0 }
   0x2   :  { %12 = vsyncpa [#allocation5], 0  ;;  %s30_s20 = sshll.u32 %s726_s1, 4  ;;  %s660_s21 = smov [#allocation6]   ;;  %s31_s20 = int_to_ptr.hbm [resolvable:$true] %s30_s20 }
   0x3   :  { %s32_s22 = sshll.u32 %s660_s21, 4  ;;  %s17_s25 = sshll.u32 %s725_s0, 4  ;;  %s33_s22 = int_to_ptr.vmem [resolvable:$true] %s32_s22  ;;  %s18_s25 = int_to_ptr.hbm [resolvable:$true] %s17_s25 }
   0x4   :  { %s661_s26 = smov 128   ;;  %s662_s27 = smov 8  }
   0x5   :  { %38 = dma.hbm_to_vmem [thread:$0]  %s31_s20, 2048, %s33_s22, [#allocation7], %s661_s26, %s661_s26, %s662_s27  }
   0x6   :  { %s663_s28 = smov [#allocation3]   ;;  %s45_s1 = sshll.u32 %s728_s3, 4  ;;  %s46_s1 = int_to_ptr.hbm [resolvable:$true] %s45_s1 }
   0x7   :  { %s19_s29 = sshll.u32 %s663_s28, 4  ;;  %s664_s0 = smov [#allocation8]   ;;  %s20_s29 = int_to_ptr.vmem [resolvable:$true] %s19_s29 }
   0x8   :  { %25 = dma.hbm_to_vmem [thread:$0]  %s18_s25, 256, %s20_s29, [#allocation4], %s661_s26, %s661_s26, %s662_s27  }
   0x9   :  { %s47_s7 = sshll.u32 %s664_s0, 4  ;;  %s665_s8 = smov 64   ;;  %s48_s7 = int_to_ptr.vmem [resolvable:$true] %s47_s7 }
   0xa   :  { %s666_s9 = smov 4  }
   0xb   :  { %53 = dma.hbm_to_vmem [thread:$0]  %s46_s1, 2048, %s48_s7, [#allocation7], %s665_s8, %s665_s8, %s666_s9  }
   0xc   :  { %654 = dma.done.wait [#allocation4], 256  }
   0xd   :  { %655 = vsyncadd [#allocation4], 4294967040 }
   0xe   :  { %656 = dma.done.wait [#allocation7], 4096  }
   0xf   :  { %657 = vsyncadd [#allocation7], 4294963200  ;;  %v447_v0 = vld [vmem:[#allocation6 + $0x70] sm:$0xf]  ;;  %v532_v1 = vld [vmem:[#allocation6 + $0x74] sm:$0xf0] }
  0x10   :  { %v531_v2 = vld [vmem:[#allocation6 + $0x74] sm:$0xf]  ;;  %v448_v3 = vor.u32 %v532_v1, %v447_v0  ;;  %v449_v4 = vld [vmem:[#allocation6 + $0x78] sm:$0xf0]  ;;  %v439_v5 = vld [vmem:[#allocation6 + $0x60] sm:$0xf] }
  0x11   :  { %v530_v6 = vld [vmem:[#allocation6 + $0x64] sm:$0xf0]  ;;  %v452_v7 = vor.u32 %v531_v2, %v449_v4  ;;  %v529_v8 = vld [vmem:[#allocation6 + $0x64] sm:$0xf]  ;;  %v441_v9 = vld [vmem:[#allocation6 + $0x68] sm:$0xf0] }
  0x12   :  { %173 = vmatpush.bf16.msra.mxu0 %v448_v3  ;;  %v440_v10 = vor.u32 %v530_v6, %v439_v5  ;;  %v444_v11 = vor.u32 %v529_v8, %v441_v9  ;;  %v431_v12 = vld [vmem:[#allocation6 + $0x50] sm:$0xf]  ;;  %v528_v13 = vld [vmem:[#allocation6 + $0x54] sm:$0xf0]  ;;  %v527_v14 = vld [vmem:[#allocation6 + $0x54] sm:$0xf] }
  0x13   :  { %187 = vmatpush.bf16.msra.mxu1 %v452_v7  ;;  %v433_v15 = vld [vmem:[#allocation6 + $0x58] sm:$0xf0]  ;;  %v432_v16 = vor.u32 %v528_v13, %v431_v12  ;;  %v423_v18 = vld [vmem:[#allocation6 + $0x40] sm:$0xf]  ;;  %v526_v19 = vld [vmem:[#allocation6 + $0x44] sm:$0xf0] }
  0x14   :  { %v436_v17 = vor.u32 %v527_v14, %v433_v15  ;;  %v525_v20 = vld [vmem:[#allocation6 + $0x44] sm:$0xf]  ;;  %v425_v21 = vld [vmem:[#allocation6 + $0x48] sm:$0xf0]  ;;  %v424_v22 = vor.u32 %v526_v19, %v423_v18  ;;  %v540_v23 = vld [vmem:[#allocation8 + $0x38] sm:$0xff]  ;;  %s667_s12 = smov [#allocation9]  }
  0x15   :  { %v548_v24 = vld [vmem:[#allocation8 + $0x78] sm:$0xff]  ;;  %v428_v25 = vor.u32 %v525_v20, %v425_v21  ;;  %v415_v26 = vld [vmem:[#allocation6 + $0x30] sm:$0xf]  ;;  %v523_v28 = vld [vmem:[#allocation6 + $0x34] sm:$0xf]  ;;  %339 = vmatpush.bf16.msra.mxu2 %v540_v23  ;;  %s373_s13 = sshll.u32 %s667_s12, 4  ;;  %s374_s13 = int_to_ptr.vmem [resolvable:$true] %s373_s13 }
  0x16   :  { %174 = vmatpush.bf16.msra.mxu0 %v440_v10  ;;  %v524_v27 = vld [vmem:[#allocation6 + $0x34] sm:$0xf0]  ;;  %v417_v29 = vld [vmem:[#allocation6 + $0x38] sm:$0xf0]  ;;  %353 = vmatpush.bf16.msra.mxu3 %v548_v24  ;;  %v539_v30 = vld [vmem:[#allocation8 + $0x30] sm:$0xff]  ;;  %s375_s16 = sshll.u32 %s730_s5, 4  ;;  %s376_s16 = int_to_ptr.hbm [resolvable:$true] %s375_s16 }
  0x17   :  { %188 = vmatpush.bf16.msra.mxu1 %v444_v11  ;;  %v547_v31 = vld [vmem:[#allocation8 + $0x70] sm:$0xff]  ;;  %v416_v32 = vor.u32 %v524_v27, %v415_v26  ;;  %v420_v33 = vor.u32 %v523_v28, %v417_v29  ;;  %v407_v34 = vld [vmem:[#allocation6 + $0x20] sm:$0xf]  ;;  %v522_v35 = vld [vmem:[#allocation6 + $0x24] sm:$0xf0] }
  0x18   :  { %v521_v36 = vld [vmem:[#allocation6 + $0x24] sm:$0xf]  ;;  %v409_v37 = vld [vmem:[#allocation6 + $0x28] sm:$0xf0]  ;;  %v408_v40 = vor.u32 %v522_v35, %v407_v34  ;;  %v399_v42 = vld [vmem:[#allocation6 + $0x10] sm:$0xf] }
  0x19   :  { %340 = vmatpush.bf16.msra.mxu2 %v539_v30  ;;  %v538_v38 = vld [vmem:[#allocation8 + $0x28] sm:$0xff]  ;;  %v412_v41 = vor.u32 %v521_v36, %v409_v37  ;;  %v520_v43 = vld [vmem:[#allocation6 + $0x14] sm:$0xf0]  ;;  %v519_v44 = vld [vmem:[#allocation6 + $0x14] sm:$0xf] }
  0x1a   :  { %175 = vmatpush.bf16.msra.mxu0 %v432_v16  ;;  %354 = vmatpush.bf16.msra.mxu3 %v547_v31  ;;  %v546_v39 = vld [vmem:[#allocation8 + $0x68] sm:$0xff]  ;;  %v401_v45 = vld [vmem:[#allocation6 + $0x18] sm:$0xf0]  ;;  %v537_v46 = vld [vmem:[#allocation8 + $0x20] sm:$0xff]  ;;  %v400_v48 = vor.u32 %v520_v43, %v399_v42 }
  0x1b   :  { %189 = vmatpush.bf16.msra.mxu1 %v436_v17  ;;  %v545_v47 = vld [vmem:[#allocation8 + $0x60] sm:$0xff]  ;;  %v404_v49 = vor.u32 %v519_v44, %v401_v45  ;;  %v518_v51 = vld [vmem:[#allocation6 + $0x4] sm:$0xf0]  ;;  %v393_v53 = vld [vmem:[#allocation6 + $0x8] sm:$0xf0] }
  0x1c   :  { %v391_v50 = vld [vmem:[#allocation6] sm:$0xf]  ;;  %v517_v52 = vld [vmem:[#allocation6 + $0x4] sm:$0xf]  ;;  %v68_v55 = vld [vmem:[#allocation3] sm:$0xff] }
  0x1d   :  { %341 = vmatpush.bf16.msra.mxu2 %v538_v38  ;;  %v392_v54 = vor.u32 %v518_v51, %v391_v50  ;;  %v69_v56 = vld [vmem:[#allocation3 + $0x8] sm:$0xff]  ;;  %v396_v57 = vor.u32 %v517_v52, %v393_v53  ;;  %v535_v61 = vld [vmem:[#allocation8 + $0x10] sm:$0xff]  ;;  %v534_v63 = vld [vmem:[#allocation8 + $0x8] sm:$0xff] }
  0x1e   :  { %176 = vmatpush.bf16.msra.mxu0 %v424_v22  ;;  %355 = vmatpush.bf16.msra.mxu3 %v546_v39  ;;  %v70_v58 = vpack.c.bf16 %v69_v56, %v68_v55  ;;  %v536_v59 = vld [vmem:[#allocation8 + $0x18] sm:$0xff]  ;;  %v543_v62 = vld [vmem:[#allocation8 + $0x50] sm:$0xff]  ;;  %v542_v0 = vld [vmem:[#allocation8 + $0x48] sm:$0xff] }
  0x1f   :  { %190 = vmatpush.bf16.msra.mxu1 %v428_v25  ;;  %v544_v60 = vld [vmem:[#allocation8 + $0x58] sm:$0xff]  ;;  %v533_v1 = vld [vmem:[#allocation8] sm:$0xff]  ;;  %v87_v3 = vld [vmem:[%s727_s2] sm:$0x3] }
  0x20   :  { %v541_v2 = vld [vmem:[#allocation8 + $0x40] sm:$0xff]  ;;  %v89_v6 = vperm.slane %v87_v3, 0  ;;  %v90_v7 = vperm.slane %v87_v3, 1  ;;  %v557_v20 = vld [vmem:[%s729_s4] ss:$0 sm:$0xff] }
  0x21   :  { %342 = vmatpush.bf16.msra.mxu2 %v537_v46 }
  0x22   :  { %177 = vmatpush.bf16.msra.mxu0 %v416_v32  ;;  %356 = vmatpush.bf16.msra.mxu3 %v545_v47 }
  0x23   :  { %191 = vmatpush.bf16.msra.mxu1 %v420_v33 }
  0x25   :  { %343 = vmatpush.bf16.msra.mxu2 %v536_v59 }
  0x26   :  { %178 = vmatpush.bf16.msra.mxu0 %v408_v40  ;;  %357 = vmatpush.bf16.msra.mxu3 %v544_v60 }
  0x27   :  { %192 = vmatpush.bf16.msra.mxu1 %v412_v41 }
  0x29   :  { %344 = vmatpush.bf16.msra.mxu2 %v535_v61 }
  0x2a   :  { %179 = vmatpush.bf16.msra.mxu0 %v400_v48  ;;  %358 = vmatpush.bf16.msra.mxu3 %v543_v62 }
  0x2b   :  { %193 = vmatpush.bf16.msra.mxu1 %v404_v49 }
  0x2d   :  { %345 = vmatpush.bf16.msra.mxu2 %v534_v63 }
  0x2e   :  { %180 = vmatpush.bf16.msra.mxu0 %v392_v54  ;;  %359 = vmatpush.bf16.msra.mxu3 %v542_v0 }
  0x2f   :  { %194 = vmatpush.bf16.msra.mxu1 %v396_v57 }
  0x31   :  { %181 = vmatmul.bf16.vlgmr.msra.gmra.mxu0 %v70_v58  ;;  %346 = vmatpush.bf16.msra.mxu2 %v533_v1 }
  0x32   :  { %195 = vmatmul.bf16.vlgmr.msra.gmra.mxu1 %v70_v58  ;;  %360 = vmatpush.bf16.msra.mxu3 %v541_v2 }
  0xae   :  { %v182_v4 = vpop.f32.mrf.mxu0 }
  0xaf   :  { %v196_v5 = vpop.f32.mrf.mxu1  ;;  %v183_v8 = vadd.f32 %v182_v4, %v89_v6 }
  0xb0   :  { %v197_v9 = vadd.f32 %v196_v5, %v90_v7 }
  0xb1   :  { %v201_v14 = vmax.f32 %v183_v8, 0.0 }
  0xb2   :  { %v202_v16 = vmax.f32 %v197_v9, 0.0 }
  0xb6   :  { %v184_v10 = vpop.f32.mrf.mxu0 }
  0xb7   :  { %v185_v11 = vadd.f32 %v184_v10, %v89_v6  ;;  %v198_v12 = vpop.f32.mrf.mxu1 }
  0xb8   :  { %v199_v13 = vadd.f32 %v198_v12, %v90_v7 }
  0xb9   :  { %v203_v15 = vmax.f32 %v185_v11, 0.0 }
  0xba   :  { %v204_v17 = vmax.f32 %v199_v13, 0.0 }
  0xbb   :  { %v205_v18 = vpack.c.bf16 %v203_v15, %v201_v14 }
  0xbc   :  { %v206_v19 = vpack.c.bf16 %v204_v17, %v202_v16 }
  0xbd   :  { %347 = vmatmul.bf16.vlgmr.msra.gmra.mxu2 %v205_v18 }
  0xbe   :  { %361 = vmatmul.bf16.vlgmr.msra.gmra.mxu3 %v206_v19 }
 0x140   :  { %v348_v21 = vpop.f32.mrf.mxu2 }
 0x141   :  { %v349_v22 = vadd.f32 %v557_v20, %v348_v21  ;;  %v362_v23 = vpop.f32.mrf.mxu3 }
 0x143   :  { %v363_v24 = vadd.f32 %v362_v23, %v349_v22 }
 0x145   :  { %367 = vst [vmem:[#allocation9] sm:$0xff] %v363_v24 }
 0x148   :  { %v350_v25 = vpop.f32.mrf.mxu2 }
 0x149   :  { %v351_v26 = vadd.f32 %v557_v20, %v350_v25  ;;  %v364_v27 = vpop.f32.mrf.mxu3 }
 0x14b   :  { %v365_v28 = vadd.f32 %v364_v27, %v351_v26 }
 0x14d   :  { %368 = vst [vmem:[#allocation9 + $0x8] sm:$0xff] %v365_v28 }
 0x14e   :  { %381 = dma.vmem_to_hbm [thread:$0]  %s374_s13, 256, %s376_s16, [#allocation5], %s661_s26, %s661_s26, %s662_s27  }
 0x14f   :  { %658 = dma.done.wait [#allocation5], 256  }
 0x150   :  { %659 = vsyncadd [#allocation5], 4294967040 }
 0x151   :  { %386 = vsyncpa [#allocation4], 1 }
 0x152   :  { %387 = vsyncpa [#allocation7], 1 }
 0x153   :  { %388 = vsyncpa [#allocation5], 1 }

</bundles_post_ra>
